<compile_context>
chip_gen: v7x
topology: tpu7x:2x2x1
jax: 0.10.0
libtpu: 0.0.40
codegen_flags: <defaults>
</compile_context>

<pallas_src>
import jax
import jax.numpy as jnp
import numpy as np
from jax.experimental import pallas as pl
from jax.experimental.pallas import tpu as pltpu

_LANE = 128  # TPU vreg lane width


def _rnn_fcn_kernel(x_ref, wih0_ref, whh0_ref, w1cat_ref, wfc_ref, bfc_ref,
                    out_ref):
    T, B, D = x_ref.shape          # time-major input
    Hp = whh0_ref.shape[0]
    Vp = wfc_ref.shape[1]
    bf16 = jnp.bfloat16

    # Hoisted layer-0 input projection for all timesteps at once (bf16 MXU,
    # f32 accumulation).  (T, B, D) -> (T*B, D) is layout-trivial.
    xp = jnp.dot(x_ref[...].reshape(T * B, D).astype(bf16), wih0_ref[...],
                 preferred_element_type=jnp.float32).reshape(T, B, Hp)

    # bf16 weights: 8 + 16 vregs live across the unroll (no spill pressure).
    whh0 = whh0_ref[...]           # (Hp,  Hp)  bf16
    w1cat = w1cat_ref[...]         # (2Hp, Hp)  bf16  == [W_ih1^T ; W_hh1^T]

    h0 = jnp.zeros((B, Hp), jnp.float32)
    h1 = jnp.zeros((B, Hp), jnp.float32)
    h1_hist = []
    # Static unroll: correct choice at T=8 (LLO visibility).
    # TODO(synk): switch to lax.fori_loop with VMEM-carried state if T grows
    # beyond a few dozen (vreg / instruction-memory pressure).
    for t in range(T):
        # Layer 0: h0_t = relu(x_t @ W_ih0^T + h0_{t-1} @ W_hh0^T)   (no bias)
        h0 = jnp.maximum(
            xp[t] + jnp.dot(h0.astype(bf16), whh0,
                            preferred_element_type=jnp.float32),
            0.0)
        # nn.RNN inter-layer dropout (p=0.5) is identity in eval mode.
        # Layer 1 (fused): h1_t = relu([h0_t, h1_{t-1}] @ [W_ih1^T ; W_hh1^T])
        h_cat = jnp.concatenate([h0, h1], axis=-1).astype(bf16)   # (B, 2Hp)
        h1 = jnp.maximum(
            jnp.dot(h_cat, w1cat, preferred_element_type=jnp.float32), 0.0)
        h1_hist.append(h1)         # kept live in vregs, no per-step VMEM store

    # Hoisted FC head over all T*B rows + one lane-dense output store.
    h1_all = jnp.stack(h1_hist, axis=0).reshape(T * B, Hp)
    y = (jnp.dot(h1_all.astype(bf16), wfc_ref[...],
                 preferred_element_type=jnp.float32)
         + bfc_ref[...])
    out_ref[...] = y.reshape(T, B, Vp)


def _pad2d(a, shape):
    out = jnp.zeros(shape, jnp.float32)
    return out.at[:a.shape[0], :a.shape[1]].set(a)


def prepare_params(params):
    """One-time host-side prep: transpose to (in, out) layout, zero-pad hidden /
    output dims up to the 128-lane width, stack layer-1's two weights into one
    (2*Hp, Hp) matrix, and cast matmul weights to bf16 (f32 accumulation in the
    kernel)."""
    D = params["w_ih0"].shape[1]
    H = params["w_hh0"].shape[0]
    V = params["w_fc"].shape[0]
    Hp = ((H + _LANE - 1) // _LANE) * _LANE
    Vp = ((V + _LANE - 1) // _LANE) * _LANE
    wih1_t = _pad2d(params["w_ih1"].T, (Hp, Hp))
    whh1_t = _pad2d(params["w_hh1"].T, (Hp, Hp))
    return {
        "wih0_t":  _pad2d(params["w_ih0"].T, (D, Hp)).astype(jnp.bfloat16),
        "whh0_t":  _pad2d(params["w_hh0"].T, (Hp, Hp)).astype(jnp.bfloat16),
        # fused layer-1 weight: [W_ih1^T ; W_hh1^T]  -> one K=2*Hp matmul/step
        "w1cat_t": jnp.concatenate([wih1_t, whh1_t], axis=0).astype(jnp.bfloat16),
        "wfc_t":   _pad2d(params["w_fc"].T, (Hp, Vp)).astype(jnp.bfloat16),
        "bfc":     _pad2d(params["b_fc"].reshape(1, V), (1, Vp)),   # f32
    }
    # Padded rows/cols are zero, so padded hidden lanes stay exactly 0 through
    # relu / the fused layer-1 matmul and contribute nothing to real outputs.


@jax.jit
def rnn_model_forward(x, prep):
    """x: (B, T, D) float32.  Returns the PADDED (B, T, Vp) float32 output;
    the consumer slices (or fuses) the [:, :, :out_features] channel slice."""
    B, T, _ = x.shape
    Vp = prep["wfc_t"].shape[1]

    # Layout plumbing (not compute hoisting): time-major so each per-step slice
    # inside the kernel is a clean leading-axis (B, Hp) vreg view.
    x_tbd = jnp.transpose(x, (1, 0, 2))

    vmem_spec = pl.BlockSpec(memory_space=pltpu.MemorySpace.VMEM)
    out_tbv = pl.pallas_call(
        _rnn_fcn_kernel,
        out_shape=jax.ShapeDtypeStruct((T, B, Vp), jnp.float32),
        in_specs=[vmem_spec] * 6,
        out_specs=vmem_spec,
        # Total footprint is well under 1 MiB, fine on v5e/v6e/v7x VMEM.
        # TODO(synk): when B grows (>= ~16), add grid=(B // B_tile,) with
        # dimension_semantics=("parallel",) (v7x dual-TC split), per-tile
        # operands, and an explicit vmem_limit_bytes.
    )(x_tbd, prep["wih0_t"], prep["whh0_t"], prep["w1cat_t"],
      prep["wfc_t"], prep["bfc"])

    return jnp.transpose(out_tbv, (1, 0, 2))   # back to batch-first (padded)


def _reference_forward(x, params):
    """Pure-JAX f32 reference (eval-mode 2-layer ReLU RNN + Linear)."""
    B, T, D = x.shape
    H = params["w_hh0"].shape[0]
    h0 = jnp.zeros((B, H), jnp.float32)
    h1 = jnp.zeros((B, H), jnp.float32)
    outs = []
    for t in range(T):
        x_t = x[:, t, :]
        h0 = jax.nn.relu(x_t @ params["w_ih0"].T + h0 @ params["w_hh0"].T)
        h1 = jax.nn.relu(h0 @ params["w_ih1"].T + h1 @ params["w_hh1"].T)
        outs.append(h1 @ params["w_fc"].T + params["b_fc"])
    return jnp.stack(outs, axis=1)


def _reference_forward_mixed(x, prep, out_features):
    """Pure-JAX reference with the SAME mixed precision as the kernel
    (bf16 matmul operands, f32 accumulation / state)."""
    B, T, D = x.shape
    Hp = prep["whh0_t"].shape[0]
    bf16 = jnp.bfloat16
    dot = lambda a, b: jnp.dot(a.astype(bf16), b,
                               preferred_element_type=jnp.float32)
    xp = dot(x.reshape(B * T, D), prep["wih0_t"]).reshape(B, T, Hp)
    h0 = jnp.zeros((B, Hp), jnp.float32)
    h1 = jnp.zeros((B, Hp), jnp.float32)
    outs = []
    for t in range(T):
        h0 = jax.nn.relu(xp[:, t, :] + dot(h0, prep["whh0_t"]))
        h1 = jax.nn.relu(dot(jnp.concatenate([h0, h1], axis=-1),
                             prep["w1cat_t"]))
        outs.append(dot(h1, prep["wfc_t"]) + prep["bfc"])
    return jnp.stack(outs, axis=1)[:, :, :out_features]


def init_params(key, input_size, hidden_size):
    """Deterministic init mimicking PyTorch's U(-1/sqrt(H), 1/sqrt(H))."""
    k = 1.0 / np.sqrt(hidden_size)
    keys = jax.random.split(key, 6)
    u = lambda kk, shape: jax.random.uniform(kk, shape, jnp.float32, -k, k)
    return {
        "w_ih0": u(keys[0], (hidden_size, input_size)),
        "w_hh0": u(keys[1], (hidden_size, hidden_size)),
        "w_ih1": u(keys[2], (hidden_size, hidden_size)),
        "w_hh1": u(keys[3], (hidden_size, hidden_size)),
        "w_fc":  u(keys[4], (input_size, hidden_size)),
        "b_fc":  u(keys[5], (input_size,)),
    }


if __name__ == "__main__":
    B, T = 8, 8      # B=8 fills all 8 f32 sublanes / MXU rows (perf review)
    VOCAB = 32       # len(set_) stand-in (vocab / input_size / output_size)
    HIDDEN = 100     # matches nn.RNN(hidden_size=100)

    key = jax.random.PRNGKey(0)
    kx, kp = jax.random.split(key)
    x = jax.random.normal(kx, (B, T, VOCAB), jnp.float32)
    params = init_params(kp, VOCAB, HIDDEN)

    prep = prepare_params(params)             # one-time transpose + pad + bf16
    out_padded = rnn_model_forward(x, prep)
    out_padded = jax.block_until_ready(out_padded)
    out = np.asarray(out_padded)[:, :, :VOCAB]   # channel slice at the consumer

    # Tight check: same mixed-precision (bf16 x bf16 -> f32) arithmetic as the
    # kernel — validates the fused-weight / hoisted-matmul kernel structure.
    ref_mixed = _reference_forward_mixed(x, prep, VOCAB)
    np.testing.assert_allclose(out, np.asarray(ref_mixed), atol=2e-3, rtol=2e-3)

    # Looser check vs the full-f32 PyTorch-equivalent reference: tolerance
    # reflects the bf16 weight cast adopted per the performance review.
    ref_f32 = _reference_forward(x, params)
    np.testing.assert_allclose(out, np.asarray(ref_f32), atol=2e-2, rtol=2e-2)

    assert out.shape == (B, T, VOCAB) and out.dtype == np.float32
    print("KERNEL_OK")
</pallas_src>

<mosaic_0001>
module attributes {stable_mosaic.version = 11 : i64} {
  func.func @_rnn_fcn_kernel(%arg0: memref<8x8x32xf32, #tpu.memory_space<vmem>>, %arg1: memref<32x128xbf16, #tpu.memory_space<vmem>>, %arg2: memref<128x128xbf16, #tpu.memory_space<vmem>>, %arg3: memref<256x128xbf16, #tpu.memory_space<vmem>>, %arg4: memref<128x128xbf16, #tpu.memory_space<vmem>>, %arg5: memref<1x128xf32, #tpu.memory_space<vmem>>, %arg6: memref<8x8x128xf32, #tpu.memory_space<vmem>>) attributes {dimension_semantics = [], scalar_prefetch = 0 : i64, scratch_operands = 0 : i64, tpu.core_type = #tpu.core_type<tc>} {
    %c0 = arith.constant 0 : index
    %c0_0 = arith.constant 0 : index
    %c0_1 = arith.constant 0 : index
    %0 = vector.load %arg0[%c0, %c0_0, %c0_1] : memref<8x8x32xf32, #tpu.memory_space<vmem>>, vector<8x8x32xf32>
    %1 = vector.shape_cast %0 : vector<8x8x32xf32> to vector<64x32xf32>
    %2 = arith.truncf %1 : vector<64x32xf32> to vector<64x32xbf16>
    %c0_2 = arith.constant 0 : index
    %c0_3 = arith.constant 0 : index
    %3 = vector.load %arg1[%c0_2, %c0_3] : memref<32x128xbf16, #tpu.memory_space<vmem>>, vector<32x128xbf16>
    %cst = arith.constant dense<0.000000e+00> : vector<64x128xf32>
    %4 = tpu.matmul %2, %3, %cst {dimension_numbers = #tpu.dot_dimension_numbers<[1], [0], [0], [1], [0, 0, 1, 1], [], []>} : vector<64x32xbf16>, vector<32x128xbf16>, vector<64x128xf32> -> vector<64x128xf32>
    %5 = vector.shape_cast %4 : vector<64x128xf32> to vector<8x8x128xf32>
    %c0_4 = arith.constant 0 : index
    %c0_5 = arith.constant 0 : index
    %6 = vector.load %arg2[%c0_4, %c0_5] : memref<128x128xbf16, #tpu.memory_space<vmem>>, vector<128x128xbf16>
    %c0_6 = arith.constant 0 : index
    %c0_7 = arith.constant 0 : index
    %7 = vector.load %arg3[%c0_6, %c0_7] : memref<256x128xbf16, #tpu.memory_space<vmem>>, vector<256x128xbf16>
    %cst_8 = arith.constant 0.000000e+00 : f32
    %8 = vector.broadcast %cst_8 : f32 to vector<8x128xf32>
    %cst_9 = arith.constant 0.000000e+00 : f32
    %9 = vector.broadcast %cst_9 : f32 to vector<8x128xf32>
    %10 = vector.extract_strided_slice %5 {offsets = [0, 0, 0], sizes = [1, 8, 128], strides = [1, 1, 1]} : vector<8x8x128xf32> to vector<1x8x128xf32>
    %11 = vector.shape_cast %10 : vector<1x8x128xf32> to vector<8x128xf32>
    %12 = arith.truncf %8 : vector<8x128xf32> to vector<8x128xbf16>
    %cst_10 = arith.constant dense<0.000000e+00> : vector<8x128xf32>
    %13 = tpu.matmul %12, %6, %cst_10 {dimension_numbers = #tpu.dot_dimension_numbers<[1], [0], [0], [1], [0, 0, 1, 1], [], []>} : vector<8x128xbf16>, vector<128x128xbf16>, vector<8x128xf32> -> vector<8x128xf32>
    %14 = arith.addf %11, %13 : vector<8x128xf32>
    %cst_11 = arith.constant 0.000000e+00 : f32
    %15 = vector.broadcast %cst_11 : f32 to vector<8x128xf32>
    %16 = arith.maximumf %14, %15 : vector<8x128xf32>
    %17 = tpu.concatenate %16, %9 in 1 : vector<8x128xf32>, vector<8x128xf32> -> vector<8x256xf32>
    %18 = arith.truncf %17 : vector<8x256xf32> to vector<8x256xbf16>
    %cst_12 = arith.constant dense<0.000000e+00> : vector<8x128xf32>
    %19 = tpu.matmul %18, %7, %cst_12 {dimension_numbers = #tpu.dot_dimension_numbers<[1], [0], [0], [1], [0, 0, 1, 1], [], []>} : vector<8x256xbf16>, vector<256x128xbf16>, vector<8x128xf32> -> vector<8x128xf32>
    %cst_13 = arith.constant 0.000000e+00 : f32
    %20 = vector.broadcast %cst_13 : f32 to vector<8x128xf32>
    %21 = arith.maximumf %19, %20 : vector<8x128xf32>
    %22 = vector.extract_strided_slice %5 {offsets = [1, 0, 0], sizes = [1, 8, 128], strides = [1, 1, 1]} : vector<8x8x128xf32> to vector<1x8x128xf32>
    %23 = vector.shape_cast %22 : vector<1x8x128xf32> to vector<8x128xf32>
    %24 = arith.truncf %16 : vector<8x128xf32> to vector<8x128xbf16>
    %cst_14 = arith.constant dense<0.000000e+00> : vector<8x128xf32>
    %25 = tpu.matmul %24, %6, %cst_14 {dimension_numbers = #tpu.dot_dimension_numbers<[1], [0], [0], [1], [0, 0, 1, 1], [], []>} : vector<8x128xbf16>, vector<128x128xbf16>, vector<8x128xf32> -> vector<8x128xf32>
    %26 = arith.addf %23, %25 : vector<8x128xf32>
    %cst_15 = arith.constant 0.000000e+00 : f32
    %27 = vector.broadcast %cst_15 : f32 to vector<8x128xf32>
    %28 = arith.maximumf %26, %27 : vector<8x128xf32>
    %29 = tpu.concatenate %28, %21 in 1 : vector<8x128xf32>, vector<8x128xf32> -> vector<8x256xf32>
    %30 = arith.truncf %29 : vector<8x256xf32> to vector<8x256xbf16>
    %cst_16 = arith.constant dense<0.000000e+00> : vector<8x128xf32>
    %31 = tpu.matmul %30, %7, %cst_16 {dimension_numbers = #tpu.dot_dimension_numbers<[1], [0], [0], [1], [0, 0, 1, 1], [], []>} : vector<8x256xbf16>, vector<256x128xbf16>, vector<8x128xf32> -> vector<8x128xf32>
    %cst_17 = arith.constant 0.000000e+00 : f32
    %32 = vector.broadcast %cst_17 : f32 to vector<8x128xf32>
    %33 = arith.maximumf %31, %32 : vector<8x128xf32>
    %34 = vector.extract_strided_slice %5 {offsets = [2, 0, 0], sizes = [1, 8, 128], strides = [1, 1, 1]} : vector<8x8x128xf32> to vector<1x8x128xf32>
    %35 = vector.shape_cast %34 : vector<1x8x128xf32> to vector<8x128xf32>
    %36 = arith.truncf %28 : vector<8x128xf32> to vector<8x128xbf16>
    %cst_18 = arith.constant dense<0.000000e+00> : vector<8x128xf32>
    %37 = tpu.matmul %36, %6, %cst_18 {dimension_numbers = #tpu.dot_dimension_numbers<[1], [0], [0], [1], [0, 0, 1, 1], [], []>} : vector<8x128xbf16>, vector<128x128xbf16>, vector<8x128xf32> -> vector<8x128xf32>
    %38 = arith.addf %35, %37 : vector<8x128xf32>
    %cst_19 = arith.constant 0.000000e+00 : f32
    %39 = vector.broadcast %cst_19 : f32 to vector<8x128xf32>
    %40 = arith.maximumf %38, %39 : vector<8x128xf32>
    %41 = tpu.concatenate %40, %33 in 1 : vector<8x128xf32>, vector<8x128xf32> -> vector<8x256xf32>
    %42 = arith.truncf %41 : vector<8x256xf32> to vector<8x256xbf16>
    %cst_20 = arith.constant dense<0.000000e+00> : vector<8x128xf32>
    %43 = tpu.matmul %42, %7, %cst_20 {dimension_numbers = #tpu.dot_dimension_numbers<[1], [0], [0], [1], [0, 0, 1, 1], [], []>} : vector<8x256xbf16>, vector<256x128xbf16>, vector<8x128xf32> -> vector<8x128xf32>
    %cst_21 = arith.constant 0.000000e+00 : f32
    %44 = vector.broadcast %cst_21 : f32 to vector<8x128xf32>
    %45 = arith.maximumf %43, %44 : vector<8x128xf32>
    %46 = vector.extract_strided_slice %5 {offsets = [3, 0, 0], sizes = [1, 8, 128], strides = [1, 1, 1]} : vector<8x8x128xf32> to vector<1x8x128xf32>
    %47 = vector.shape_cast %46 : vector<1x8x128xf32> to vector<8x128xf32>
    %48 = arith.truncf %40 : vector<8x128xf32> to vector<8x128xbf16>
    %cst_22 = arith.constant dense<0.000000e+00> : vector<8x128xf32>
    %49 = tpu.matmul %48, %6, %cst_22 {dimension_numbers = #tpu.dot_dimension_numbers<[1], [0], [0], [1], [0, 0, 1, 1], [], []>} : vector<8x128xbf16>, vector<128x128xbf16>, vector<8x128xf32> -> vector<8x128xf32>
    %50 = arith.addf %47, %49 : vector<8x128xf32>
    %cst_23 = arith.constant 0.000000e+00 : f32
    %51 = vector.broadcast %cst_23 : f32 to vector<8x128xf32>
    %52 = arith.maximumf %50, %51 : vector<8x128xf32>
    %53 = tpu.concatenate %52, %45 in 1 : vector<8x128xf32>, vector<8x128xf32> -> vector<8x256xf32>
    %54 = arith.truncf %53 : vector<8x256xf32> to vector<8x256xbf16>
    %cst_24 = arith.constant dense<0.000000e+00> : vector<8x128xf32>
    %55 = tpu.matmul %54, %7, %cst_24 {dimension_numbers = #tpu.dot_dimension_numbers<[1], [0], [0], [1], [0, 0, 1, 1], [], []>} : vector<8x256xbf16>, vector<256x128xbf16>, vector<8x128xf32> -> vector<8x128xf32>
    %cst_25 = arith.constant 0.000000e+00 : f32
    %56 = vector.broadcast %cst_25 : f32 to vector<8x128xf32>
    %57 = arith.maximumf %55, %56 : vector<8x128xf32>
    %58 = vector.extract_strided_slice %5 {offsets = [4, 0, 0], sizes = [1, 8, 128], strides = [1, 1, 1]} : vector<8x8x128xf32> to vector<1x8x128xf32>
    %59 = vector.shape_cast %58 : vector<1x8x128xf32> to vector<8x128xf32>
    %60 = arith.truncf %52 : vector<8x128xf32> to vector<8x128xbf16>
    %cst_26 = arith.constant dense<0.000000e+00> : vector<8x128xf32>
    %61 = tpu.matmul %60, %6, %cst_26 {dimension_numbers = #tpu.dot_dimension_numbers<[1], [0], [0], [1], [0, 0, 1, 1], [], []>} : vector<8x128xbf16>, vector<128x128xbf16>, vector<8x128xf32> -> vector<8x128xf32>
    %62 = arith.addf %59, %61 : vector<8x128xf32>
    %cst_27 = arith.constant 0.000000e+00 : f32
    %63 = vector.broadcast %cst_27 : f32 to vector<8x128xf32>
    %64 = arith.maximumf %62, %63 : vector<8x128xf32>
    %65 = tpu.concatenate %64, %57 in 1 : vector<8x128xf32>, vector<8x128xf32> -> vector<8x256xf32>
    %66 = arith.truncf %65 : vector<8x256xf32> to vector<8x256xbf16>
    %cst_28 = arith.constant dense<0.000000e+00> : vector<8x128xf32>
    %67 = tpu.matmul %66, %7, %cst_28 {dimension_numbers = #tpu.dot_dimension_numbers<[1], [0], [0], [1], [0, 0, 1, 1], [], []>} : vector<8x256xbf16>, vector<256x128xbf16>, vector<8x128xf32> -> vector<8x128xf32>
    %cst_29 = arith.constant 0.000000e+00 : f32
    %68 = vector.broadcast %cst_29 : f32 to vector<8x128xf32>
    %69 = arith.maximumf %67, %68 : vector<8x128xf32>
    %70 = vector.extract_strided_slice %5 {offsets = [5, 0, 0], sizes = [1, 8, 128], strides = [1, 1, 1]} : vector<8x8x128xf32> to vector<1x8x128xf32>
    %71 = vector.shape_cast %70 : vector<1x8x128xf32> to vector<8x128xf32>
    %72 = arith.truncf %64 : vector<8x128xf32> to vector<8x128xbf16>
    %cst_30 = arith.constant dense<0.000000e+00> : vector<8x128xf32>
    %73 = tpu.matmul %72, %6, %cst_30 {dimension_numbers = #tpu.dot_dimension_numbers<[1], [0], [0], [1], [0, 0, 1, 1], [], []>} : vector<8x128xbf16>, vector<128x128xbf16>, vector<8x128xf32> -> vector<8x128xf32>
    %74 = arith.addf %71, %73 : vector<8x128xf32>
    %cst_31 = arith.constant 0.000000e+00 : f32
    %75 = vector.broadcast %cst_31 : f32 to vector<8x128xf32>
    %76 = arith.maximumf %74, %75 : vector<8x128xf32>
    %77 = tpu.concatenate %76, %69 in 1 : vector<8x128xf32>, vector<8x128xf32> -> vector<8x256xf32>
    %78 = arith.truncf %77 : vector<8x256xf32> to vector<8x256xbf16>
    %cst_32 = arith.constant dense<0.000000e+00> : vector<8x128xf32>
    %79 = tpu.matmul %78, %7, %cst_32 {dimension_numbers = #tpu.dot_dimension_numbers<[1], [0], [0], [1], [0, 0, 1, 1], [], []>} : vector<8x256xbf16>, vector<256x128xbf16>, vector<8x128xf32> -> vector<8x128xf32>
    %cst_33 = arith.constant 0.000000e+00 : f32
    %80 = vector.broadcast %cst_33 : f32 to vector<8x128xf32>
    %81 = arith.maximumf %79, %80 : vector<8x128xf32>
    %82 = vector.extract_strided_slice %5 {offsets = [6, 0, 0], sizes = [1, 8, 128], strides = [1, 1, 1]} : vector<8x8x128xf32> to vector<1x8x128xf32>
    %83 = vector.shape_cast %82 : vector<1x8x128xf32> to vector<8x128xf32>
    %84 = arith.truncf %76 : vector<8x128xf32> to vector<8x128xbf16>
    %cst_34 = arith.constant dense<0.000000e+00> : vector<8x128xf32>
    %85 = tpu.matmul %84, %6, %cst_34 {dimension_numbers = #tpu.dot_dimension_numbers<[1], [0], [0], [1], [0, 0, 1, 1], [], []>} : vector<8x128xbf16>, vector<128x128xbf16>, vector<8x128xf32> -> vector<8x128xf32>
    %86 = arith.addf %83, %85 : vector<8x128xf32>
    %cst_35 = arith.constant 0.000000e+00 : f32
    %87 = vector.broadcast %cst_35 : f32 to vector<8x128xf32>
    %88 = arith.maximumf %86, %87 : vector<8x128xf32>
    %89 = tpu.concatenate %88, %81 in 1 : vector<8x128xf32>, vector<8x128xf32> -> vector<8x256xf32>
    %90 = arith.truncf %89 : vector<8x256xf32> to vector<8x256xbf16>
    %cst_36 = arith.constant dense<0.000000e+00> : vector<8x128xf32>
    %91 = tpu.matmul %90, %7, %cst_36 {dimension_numbers = #tpu.dot_dimension_numbers<[1], [0], [0], [1], [0, 0, 1, 1], [], []>} : vector<8x256xbf16>, vector<256x128xbf16>, vector<8x128xf32> -> vector<8x128xf32>
    %cst_37 = arith.constant 0.000000e+00 : f32
    %92 = vector.broadcast %cst_37 : f32 to vector<8x128xf32>
    %93 = arith.maximumf %91, %92 : vector<8x128xf32>
    %94 = vector.extract_strided_slice %5 {offsets = [7, 0, 0], sizes = [1, 8, 128], strides = [1, 1, 1]} : vector<8x8x128xf32> to vector<1x8x128xf32>
    %95 = vector.shape_cast %94 : vector<1x8x128xf32> to vector<8x128xf32>
    %96 = arith.truncf %88 : vector<8x128xf32> to vector<8x128xbf16>
    %cst_38 = arith.constant dense<0.000000e+00> : vector<8x128xf32>
    %97 = tpu.matmul %96, %6, %cst_38 {dimension_numbers = #tpu.dot_dimension_numbers<[1], [0], [0], [1], [0, 0, 1, 1], [], []>} : vector<8x128xbf16>, vector<128x128xbf16>, vector<8x128xf32> -> vector<8x128xf32>
    %98 = arith.addf %95, %97 : vector<8x128xf32>
    %cst_39 = arith.constant 0.000000e+00 : f32
    %99 = vector.broadcast %cst_39 : f32 to vector<8x128xf32>
    %100 = arith.maximumf %98, %99 : vector<8x128xf32>
    %101 = tpu.concatenate %100, %93 in 1 : vector<8x128xf32>, vector<8x128xf32> -> vector<8x256xf32>
    %102 = arith.truncf %101 : vector<8x256xf32> to vector<8x256xbf16>
    %cst_40 = arith.constant dense<0.000000e+00> : vector<8x128xf32>
    %103 = tpu.matmul %102, %7, %cst_40 {dimension_numbers = #tpu.dot_dimension_numbers<[1], [0], [0], [1], [0, 0, 1, 1], [], []>} : vector<8x256xbf16>, vector<256x128xbf16>, vector<8x128xf32> -> vector<8x128xf32>
    %cst_41 = arith.constant 0.000000e+00 : f32
    %104 = vector.broadcast %cst_41 : f32 to vector<8x128xf32>
    %105 = arith.maximumf %103, %104 : vector<8x128xf32>
    %106 = vector.shape_cast %21 : vector<8x128xf32> to vector<1x8x128xf32>
    %107 = vector.shape_cast %33 : vector<8x128xf32> to vector<1x8x128xf32>
    %108 = vector.shape_cast %45 : vector<8x128xf32> to vector<1x8x128xf32>
    %109 = vector.shape_cast %57 : vector<8x128xf32> to vector<1x8x128xf32>
    %110 = vector.shape_cast %69 : vector<8x128xf32> to vector<1x8x128xf32>
    %111 = vector.shape_cast %81 : vector<8x128xf32> to vector<1x8x128xf32>
    %112 = vector.shape_cast %93 : vector<8x128xf32> to vector<1x8x128xf32>
    %113 = vector.shape_cast %105 : vector<8x128xf32> to vector<1x8x128xf32>
    %114 = tpu.concatenate %106, %107, %108, %109, %110, %111, %112, %113 in 0 : vector<1x8x128xf32>, vector<1x8x128xf32>, vector<1x8x128xf32>, vector<1x8x128xf32>, vector<1x8x128xf32>, vector<1x8x128xf32>, vector<1x8x128xf32>, vector<1x8x128xf32> -> vector<8x8x128xf32>
    %115 = vector.shape_cast %114 : vector<8x8x128xf32> to vector<64x128xf32>
    %116 = arith.truncf %115 : vector<64x128xf32> to vector<64x128xbf16>
    %c0_42 = arith.constant 0 : index
    %c0_43 = arith.constant 0 : index
    %117 = vector.load %arg4[%c0_42, %c0_43] : memref<128x128xbf16, #tpu.memory_space<vmem>>, vector<128x128xbf16>
    %cst_44 = arith.constant dense<0.000000e+00> : vector<64x128xf32>
    %118 = tpu.matmul %116, %117, %cst_44 {dimension_numbers = #tpu.dot_dimension_numbers<[1], [0], [0], [1], [0, 0, 1, 1], [], []>} : vector<64x128xbf16>, vector<128x128xbf16>, vector<64x128xf32> -> vector<64x128xf32>
    %c0_45 = arith.constant 0 : index
    %c0_46 = arith.constant 0 : index
    %119 = vector.load %arg5[%c0_45, %c0_46] : memref<1x128xf32, #tpu.memory_space<vmem>>, vector<1x128xf32>
    %120 = vector.broadcast %119 : vector<1x128xf32> to vector<64x128xf32>
    %121 = arith.addf %118, %120 : vector<64x128xf32>
    %122 = vector.shape_cast %121 : vector<64x128xf32> to vector<8x8x128xf32>
    %c0_47 = arith.constant 0 : index
    %c0_48 = arith.constant 0 : index
    %c0_49 = arith.constant 0 : index
    %123 = vector.load %arg6[%c0_47, %c0_48, %c0_49] : memref<8x8x128xf32, #tpu.memory_space<vmem>>, vector<8x8x128xf32>
    tpu.vector_store %arg6[%c0_47, %c0_48, %c0_49], %122 {strides = array<i32>} : memref<8x8x128xf32, #tpu.memory_space<vmem>>, vector<8x8x128xf32>,
    return
  }
}

</mosaic_0001>

<bundles_post_ra>
// kernel: rnn_model_forward.1
= control target key start
LH: loop header
LB: loop body
LE: loop exit
PB: predicated region body
PF: predicated region fallthrough
CT: control target
= control target key end

     0   :  { %11 = vsyncpa [#allocation3], 0  ;;  %s2314_s0 = inlined_call_operand.vmem [shape: f32[8,8,32], index: 0, kind: input, shape index: {}]   ;;  %s2315_s1 = inlined_call_operand.vmem [shape: bf16[32,128], index: 1, kind: input, shape index: {}]   ;;  %s2316_s2 = inlined_call_operand.hbm [shape: bf16[128,128], index: 2, kind: input, shape index: {}]   ;;  %s2317_s3 = inlined_call_operand.vmem [shape: bf16[256,128], index: 3, kind: input, shape index: {}]   ;;  %s2318_s4 = inlined_call_operand.hbm [shape: bf16[128,128], index: 4, kind: input, shape index: {}]   ;;  %s2319_s5 = inlined_call_operand.vmem [shape: f32[1,128], index: 5, kind: input, shape index: {}]   ;;  %s2320_s6 = inlined_call_operand.vmem [shape: f32[8,8,128], index: 6, kind: output, shape index: {}]  }
   0x1   :  { %12 = vsyncpa [#allocation5], 0  ;;  %s1775_s21 = smov [#allocation2]   ;;  %s1727_s25 = scalar_lea.hbm %s2316_s2, 1024 }
   0x2   :  { %s22_s22 = sshll.u32 %s1775_s21, 4  ;;  %p1728_p0 = scmp.ne.s32.totalorder %s2316_s2, %s1727_s25  ;;  %s23_s22 = int_to_ptr.vmem [resolvable:$true] %s22_s22 }
   0x3   :  { %p1731_p1 = scmp.lt.u32.totalorder %s1727_s25, %s2316_s2 }
   0x5   :  { %p1733_p2 = pnand %p1731_p1, %p1728_p0 }
   0x7   :  { %1736 = shalt.err (!%p1733_p2)
}
   0x8   :  { %s1737_s30 = scalar_lea.vmem %s23_s22, 1024  ;;  %p1742_p4 = scmp.lt.s32.totalorder %s23_s22, %s23_s22 }
   0x9   :  { %p1738_p3 = scmp.ne.s32.totalorder %s23_s22, %s1737_s30  ;;  %p1743_p5 = scmp.lt.s32.totalorder %s1737_s30, %s1737_s30 }
   0xb   :  { %p1744_p6 = por %p1743_p5, %p1742_p4 }
   0xd   :  { %p1745_p7 = pnand %p1744_p6, %p1738_p3 }
   0xf   :  { %1748 = shalt.err (!%p1745_p7)
}
  0x10   :  { %s1776_s7 = smov 64   ;;  %s1777_s8 = smov 4  }
  0x11   :  { %28 = dma.hbm_to_vmem [thread:$0]  %s2316_s2, 1024, %s23_s22, [#allocation3], %s1776_s7, %s1776_s7, %s1777_s8  }
  0x12   :  { %s1778_s11 = smov [#allocation4]   ;;  %s1749_s15 = scalar_lea.hbm %s2318_s4, 1024 }
  0x13   :  { %s36_s12 = sshll.u32 %s1778_s11, 4  ;;  %p1750_p8 = scmp.ne.s32.totalorder %s2318_s4, %s1749_s15  ;;  %s37_s12 = int_to_ptr.vmem [resolvable:$true] %s36_s12 }
  0x14   :  { %p1753_p9 = scmp.lt.u32.totalorder %s1749_s15, %s2318_s4 }
  0x16   :  { %p1755_p10 = pnand %p1753_p9, %p1750_p8 }
  0x18   :  { %1758 = shalt.err (!%p1755_p10)
}
  0x19   :  { %s1759_s20 = scalar_lea.vmem %s37_s12, 1024  ;;  %p1764_p12 = scmp.lt.s32.totalorder %s37_s12, %s37_s12 }
  0x1a   :  { %p1760_p11 = scmp.ne.s32.totalorder %s37_s12, %s1759_s20  ;;  %p1765_p13 = scmp.lt.s32.totalorder %s1759_s20, %s1759_s20 }
  0x1c   :  { %p1766_p0 = por %p1765_p13, %p1764_p12 }
  0x1e   :  { %p1767_p1 = pnand %p1766_p0, %p1760_p11 }
  0x20   :  { %1770 = shalt.err (!%p1767_p1)
}
  0x21   :  { %42 = dma.hbm_to_vmem [thread:$0]  %s2318_s4, 1024, %s37_s12, [#allocation5], %s1776_s7, %s1776_s7, %s1777_s8  }
  0x22   :  { %1771 = dma.done.wait [#allocation3], 1024  }
  0x23   :  { %1772 = vsyncadd [#allocation3], 4294966272 }
  0x24   :  { %1773 = dma.done.wait [#allocation5], 1024  }
  0x25   :  { %1774 = vsyncadd [#allocation5], 4294966272  ;;  %v1779_v0 = vmov 0.0   ;;  %vm1780_vm0 = vmmov 0   ;;  %v1845_v1 = vld [vmem:[#allocation2] sm:$0xff]   ;;  %v1848_v2 = vld [vmem:[#allocation2 + $0x8] sm:$0xff]  }
  0x26   :  { %1501 = vmatprep.subr.bf16.mxu1 %v1779_v0  ;;  %1517 = vmatprep.mubr.msk.bf16.mxu1 %vm1780_vm0, %v1779_v0  ;;  %v1698_v3 = vld [vmem:[%s2315_s1] sm:$0xff]   ;;  %v1855_v4 = vld [vmem:[#allocation2 + $0x10] sm:$0xff]   ;;  %v1700_v5 = vld [vmem:[%s2315_s1 + $0x8] sm:$0xff]   ;;  %vm80_vm1 = vcmask 261120   ;;  %v1781_v31 = vmov 0   ;;  %v1782_v40 = vmov 0.0|0.0  }
  0x27   :  { %1502 = vmatpush3.bf16.msra.mxu1 %v1845_v1  ;;  %1489 = vmatprep.subr.bf16.mxu0 %v1698_v3  ;;  %v1861_v6 = vld [vmem:[#allocation2 + $0x18] sm:$0xff]   ;;  %v52_v7 = vld [vmem:[%s2314_s0] sm:$0xff]  ;;  %v53_v8 = vld [vmem:[%s2314_s0 + $0x8] sm:$0xff] }
  0x28   :  { %1503 = vmatprep.subr.bf16.mxu1 %v1779_v0  ;;  %1490 = vmatpush3.bf16.msra.mxu0 %v1698_v3  ;;  %v54_v9 = vld [vmem:[%s2314_s0 + $0x10] sm:$0xff]  ;;  %v60_v10 = vpack.c.bf16 %v53_v8, %v52_v7  ;;  %v55_v11 = vld [vmem:[%s2314_s0 + $0x18] sm:$0xff]  ;;  %v1877_v13 = vld [vmem:[#allocation2 + $0x20] sm:$0xff]  }
  0x29   :  { %1491 = vmatprep.subr.bf16.mxu0 %v1700_v5  ;;  %v61_v12 = vpack.c.bf16 %v55_v11, %v54_v9  ;;  %v1883_v14 = vld [vmem:[%s2317_s3 + $0x40] sm:$0xff]   ;;  %v1895_v16 = vld [vmem:[%s2317_s3 + $0x48] sm:$0xff]   ;;  %v1909_v18 = vld [vmem:[%s2317_s3 + $0x50] sm:$0xff]  }
  0x2a   :  { %1493 = vmatprep.mubr.msk.bf16.mxu0 %vm80_vm1, %v60_v10  ;;  %v1888_v15 = vld [vmem:[%s2317_s3] sm:$0xff]   ;;  %v1903_v17 = vld [vmem:[%s2317_s3 + $0x8] sm:$0xff]   ;;  %v1915_v20 = vld [vmem:[#allocation2 + $0x30] sm:$0xff]  }
  0x2b   :  { %1504 = vmatpush3.bf16.msra.mxu1 %v1848_v2  ;;  %v1912_v19 = vld [vmem:[#allocation2 + $0x28] sm:$0xff]   ;;  %v1921_v21 = vld [vmem:[%s2317_s3 + $0x10] sm:$0xff]   ;;  %v1927_v22 = vld [vmem:[%s2317_s3 + $0x58] sm:$0xff]  }
  0x2c   :  { %1505 = vmatprep.subr.bf16.mxu1 %v1779_v0  ;;  %1492 = vmatpush3.bf16.msra.mxu0 %v1700_v5  ;;  %v56_v23 = vld [vmem:[%s2314_s0 + $0x20] sm:$0xff]  ;;  %v57_v24 = vld [vmem:[%s2314_s0 + $0x28] sm:$0xff]  ;;  %v1939_v25 = vld [vmem:[%s2317_s3 + $0x18] sm:$0xff]  }
  0x2d   :  { %1238 = vmatprep.subr.bf16.mxu0 %v1883_v14  ;;  %v62_v26 = vpack.c.bf16 %v57_v24, %v56_v23  ;;  %v1945_v27 = vld [vmem:[%s2317_s3 + $0x60] sm:$0xff]   ;;  %v1947_v28 = vld [vmem:[#allocation2 + $0x38] sm:$0xff]   ;;  %v1962_v30 = vld [vmem:[%s2317_s3 + $0x68] sm:$0xff]  }
  0x2e   :  { %v1956_v29 = vld [vmem:[%s2317_s3 + $0x20] sm:$0xff]   ;;  %v58_v32 = vld [vmem:[%s2314_s0 + $0x30] sm:$0xff]  ;;  %v59_v33 = vld [vmem:[%s2314_s0 + $0x38] sm:$0xff] }
  0x2f   :  { %1506 = vmatpush3.bf16.msra.mxu1 %v1855_v4  ;;  %1494 = vmatmul.mubr.msk.bf16.vlgmr.msra.gmra.mrb[0].mxu0 %vm80_vm1, %v61_v12  ;;  %v1997_v34 = vld [vmem:[%s2317_s3 + $0x28] sm:$0xff]   ;;  %v63_v35 = vpack.c.bf16 %v59_v33, %v58_v32  ;;  %v2004_v36 = vld [vmem:[%s2317_s3 + $0x70] sm:$0xff]   ;;  %v2016_v38 = vld [vmem:[%s2317_s3 + $0x78] sm:$0xff]  }
  0x30   :  { %1507 = vmatprep.subr.bf16.mxu1 %v1779_v0  ;;  %1239 = vmatpush3.bf16.msra.mxu0 %v1888_v15  ;;  %v2010_v37 = vld [vmem:[%s2317_s3 + $0x30] sm:$0xff]   ;;  %v2021_v39 = vld [vmem:[%s2317_s3 + $0x38] sm:$0xff]  }
  0x31   :  { %1240 = vmatprep.subr.bf16.mxu0 %v1895_v16  ;;  %1497 = vmatprep.mubr.msk.bf16.mxu0 %vm80_vm1, %v62_v26 }
  0x33   :  { %1508 = vmatpush3.bf16.msra.mxu1 %v1861_v6 }
  0x34   :  { %1509 = vmatprep.subr.bf16.mxu1 %v1779_v0  ;;  %1241 = vmatpush3.bf16.msra.mxu0 %v1903_v17 }
  0x35   :  { %1242 = vmatprep.subr.bf16.mxu0 %v1909_v18 }
  0x37   :  { %1510 = vmatpush3.bf16.msra.mxu1 %v1877_v13  ;;  %1498 = vmatmul.mubr.msk.bf16.gmra.mrb[4].mxu0 %vm80_vm1, %v63_v35 }
  0x38   :  { %1511 = vmatprep.subr.bf16.mxu1 %v1779_v0  ;;  %1243 = vmatpush3.bf16.msra.mxu0 %v1921_v21 }
  0x39   :  { %1244 = vmatprep.subr.bf16.mxu0 %v1927_v22  ;;  %426 = vmatprep.mubr.bf16.mxu0 %v1782_v40 }
  0x3b   :  { %1512 = vmatpush3.bf16.msra.mxu1 %v1912_v19 }
  0x3c   :  { %1513 = vmatprep.subr.bf16.mxu1 %v1779_v0  ;;  %1245 = vmatpush3.bf16.msra.mxu0 %v1939_v25 }
  0x3d   :  { %1246 = vmatprep.subr.bf16.mxu0 %v1945_v27 }
  0x3f   :  { %1514 = vmatpush3.bf16.msra.mxu1 %v1915_v20 }
  0x40   :  { %1515 = vmatprep.subr.bf16.mxu1 %v1779_v0  ;;  %1247 = vmatpush3.bf16.msra.mxu0 %v1956_v29 }
  0x41   :  { %1248 = vmatprep.subr.bf16.mxu0 %v1962_v30 }
  0x43   :  { %1516 = vmatpush3.bf16.msra.mxu1 %v1947_v28 }
  0x44   :  { %1521 = vmatprep.subr.bf16.mxu1 %v1779_v0  ;;  %1249 = vmatpush3.bf16.msra.mxu0 %v1997_v34 }
  0x45   :  { %1250 = vmatprep.subr.bf16.mxu0 %v2004_v36 }
  0x46   :  { %1518 = vmatmul.mubr.bf16.vlgmr.msra.gmra.mrb[0].mxu1 %v1781_v31 }
  0x47   :  { %1522 = vmatpush3.bf16.msra.mxu1 %v1845_v1  ;;  %1537 = vmatprep.mubr.msk.bf16.mxu1 %vm1780_vm0, %v1779_v0 }
  0x48   :  { %1523 = vmatprep.subr.bf16.mxu1 %v1779_v0  ;;  %1251 = vmatpush3.bf16.msra.mxu0 %v2010_v37 }
  0x49   :  { %1252 = vmatprep.subr.bf16.mxu0 %v2016_v38 }
  0x4b   :  { %1524 = vmatpush3.bf16.msra.mxu1 %v1848_v2 }
  0x4c   :  { %1525 = vmatprep.subr.bf16.mxu1 %v1779_v0  ;;  %1253 = vmatpush3.bf16.msra.mxu0 %v2021_v39 }
  0x4d   :  { %1269 = vmatprep.subr.bf16.mxu0 %v1883_v14 }
  0x4f   :  { %1526 = vmatpush3.bf16.msra.mxu1 %v1855_v4 }
  0x50   :  { %1527 = vmatprep.subr.bf16.mxu1 %v1779_v0 }
  0x53   :  { %1528 = vmatpush3.bf16.msra.mxu1 %v1861_v6 }
  0x54   :  { %1529 = vmatprep.subr.bf16.mxu1 %v1779_v0 }
  0x57   :  { %1530 = vmatpush3.bf16.msra.mxu1 %v1877_v13 }
  0x58   :  { %1531 = vmatprep.subr.bf16.mxu1 %v1779_v0 }
  0x5b   :  { %1532 = vmatpush3.bf16.msra.mxu1 %v1912_v19 }
  0x5c   :  { %1533 = vmatprep.subr.bf16.mxu1 %v1779_v0 }
  0x5f   :  { %1534 = vmatpush3.bf16.msra.mxu1 %v1915_v20 }
  0x60   :  { %1535 = vmatprep.subr.bf16.mxu1 %v1779_v0 }
  0x63   :  { %1536 = vmatpush3.bf16.msra.mxu1 %v1947_v28 }
  0x64   :  { %1541 = vmatprep.subr.bf16.mxu1 %v1779_v0 }
 0x102   :  { %v2026_v41 = vpop.f32.mrb[0].mxu0 }
 0x103   :  { %v127_v42 = vpop.f32.mrb[1].mxu0 }
 0x104   :  { %v2028_v43 = vpop.f32.mrb[2].mxu0 }
 0x105   :  { %v130_v44 = vpop.f32.mrb[3].mxu0 }
 0x10a   :  { %v2064_v52 = vpop.f32.mrb[4].mxu0 }
 0x10b   :  { %v2066_v53 = vpop.f32.mrb[5].mxu0 }
 0x10c   :  { %v2068_v54 = vpop.f32.mrb[6].mxu0 }
 0x10d   :  { %v2070_v55 = vpop.f32.mrb[7].mxu0 }
 0x119   :  { %v288_v45 = vpop.f32.mrb[0].mxu1 }
 0x11a   :  { %v294_v46 = vadd.f32 %v288_v45, %v127_v42  ;;  %v1519_v47 = vpop.f32.mrb[1].mxu1 }
 0x11b   :  { %v291_v48 = vpop.f32.mrb[2].mxu1 }
 0x11c   :  { %v295_v49 = vmax.f32 %v294_v46, 0.0  ;;  %v1520_v50 = vpop.f32.mrb[3].mxu1 }
 0x11e   :  { %v296_v51 = vpack.c.bf16 %v295_v49, %v295_v49 }
 0x120   :  { %427 = vmatmul.mubr.bf16.vlgmr.msra.gmra.mrb[8].mxu0 %v296_v51  ;;  %1538 = vmatmul.mubr.bf16.vlgmr.msra.gmra.mrb[4].mxu1 %v296_v51 }
 0x121   :  { %1542 = vmatpush3.bf16.msra.mxu1 %v1845_v1  ;;  %1270 = vmatpush3.bf16.msra.mxu0 %v1888_v15 }
 0x122   :  { %1543 = vmatprep.subr.bf16.mxu1 %v1779_v0  ;;  %1271 = vmatprep.subr.bf16.mxu0 %v1895_v16 }
 0x123   :  { %1557 = vmatprep.mubr.msk.bf16.mxu1 %vm1780_vm0, %v1779_v0 }
 0x125   :  { %1544 = vmatpush3.bf16.msra.mxu1 %v1848_v2  ;;  %1272 = vmatpush3.bf16.msra.mxu0 %v1903_v17 }
 0x126   :  { %1545 = vmatprep.subr.bf16.mxu1 %v1779_v0  ;;  %1273 = vmatprep.subr.bf16.mxu0 %v1909_v18 }
 0x129   :  { %1546 = vmatpush3.bf16.msra.mxu1 %v1855_v4  ;;  %1274 = vmatpush3.bf16.msra.mxu0 %v1921_v21 }
 0x12a   :  { %1547 = vmatprep.subr.bf16.mxu1 %v1779_v0  ;;  %1275 = vmatprep.subr.bf16.mxu0 %v1927_v22 }
 0x12d   :  { %1548 = vmatpush3.bf16.msra.mxu1 %v1861_v6  ;;  %1276 = vmatpush3.bf16.msra.mxu0 %v1939_v25 }
 0x12e   :  { %1549 = vmatprep.subr.bf16.mxu1 %v1779_v0  ;;  %1277 = vmatprep.subr.bf16.mxu0 %v1945_v27 }
 0x131   :  { %1550 = vmatpush3.bf16.msra.mxu1 %v1877_v13  ;;  %1278 = vmatpush3.bf16.msra.mxu0 %v1956_v29 }
 0x132   :  { %1551 = vmatprep.subr.bf16.mxu1 %v1779_v0  ;;  %1279 = vmatprep.subr.bf16.mxu0 %v1962_v30 }
 0x135   :  { %1552 = vmatpush3.bf16.msra.mxu1 %v1912_v19  ;;  %1280 = vmatpush3.bf16.msra.mxu0 %v1997_v34 }
 0x136   :  { %1553 = vmatprep.subr.bf16.mxu1 %v1779_v0  ;;  %1281 = vmatprep.subr.bf16.mxu0 %v2004_v36 }
 0x139   :  { %1554 = vmatpush3.bf16.msra.mxu1 %v1915_v20  ;;  %1282 = vmatpush3.bf16.msra.mxu0 %v2010_v37 }
 0x13a   :  { %1555 = vmatprep.subr.bf16.mxu1 %v1779_v0  ;;  %1283 = vmatprep.subr.bf16.mxu0 %v2016_v38 }
 0x13d   :  { %1556 = vmatpush3.bf16.msra.mxu1 %v1947_v28  ;;  %1284 = vmatpush3.bf16.msra.mxu0 %v2021_v39 }
 0x13e   :  { %1561 = vmatprep.subr.bf16.mxu1 %v1779_v0  ;;  %1300 = vmatprep.subr.bf16.mxu0 %v1883_v14 }
 0x1f3   :  { %v1254_v56 = vpop.f32.mrb[8].mxu0  ;;  %v469_v57 = vpop.f32.mrb[4].mxu1 }
 0x1f4   :  { %v475_v58 = vadd.f32 %v469_v57, %v130_v44  ;;  %v1255_v59 = vpop.f32.mrb[9].mxu0  ;;  %v1539_v60 = vpop.f32.mrb[5].mxu1 }
 0x1f5   :  { %v1256_v61 = vadd.f32 %v1255_v59, %v1254_v56  ;;  %v1257_v62 = vpop.f32.mrb[10].mxu0  ;;  %v472_v63 = vpop.f32.mrb[6].mxu1 }
 0x1f6   :  { %v476_v3 = vmax.f32 %v475_v58, 0.0  ;;  %v1258_v5 = vpop.f32.mrb[11].mxu0  ;;  %v1540_v7 = vpop.f32.mrb[7].mxu1 }
 0x1f7   :  { %v2072_v8 = vmax.f32 %v1256_v61, 0.0 }
 0x1f8   :  { %v477_v9 = vpack.c.bf16 %v476_v3, %v476_v3 }
 0x1f9   :  { %v478_v10 = vpack.c.bf16 %v2072_v8, %v2072_v8 }
 0x1fa   :  { %1558 = vmatmul.mubr.bf16.vlgmr.msra.gmra.mrb[8].mxu1 %v477_v9 }
 0x1fb   :  { %511 = vmatprep.mubr.bf16.mxu0 %v478_v10  ;;  %1562 = vmatpush3.bf16.msra.mxu1 %v1845_v1 }
 0x1fc   :  { %512 = vmatmul.mubr.bf16.vlgmr.msra.gmra.mrb[12].mxu0 %v477_v9  ;;  %1563 = vmatprep.subr.bf16.mxu1 %v1779_v0 }
 0x1fd   :  { %1301 = vmatpush3.bf16.msra.mxu0 %v1888_v15  ;;  %1577 = vmatprep.mubr.msk.bf16.mxu1 %vm1780_vm0, %v1779_v0 }
 0x1fe   :  { %1302 = vmatprep.subr.bf16.mxu0 %v1895_v16 }
 0x1ff   :  { %1564 = vmatpush3.bf16.msra.mxu1 %v1848_v2 }
 0x200   :  { %1565 = vmatprep.subr.bf16.mxu1 %v1779_v0 }
 0x201   :  { %1303 = vmatpush3.bf16.msra.mxu0 %v1903_v17 }
 0x202   :  { %1304 = vmatprep.subr.bf16.mxu0 %v1909_v18 }
 0x203   :  { %1566 = vmatpush3.bf16.msra.mxu1 %v1855_v4 }
 0x204   :  { %1567 = vmatprep.subr.bf16.mxu1 %v1779_v0 }
 0x205   :  { %1305 = vmatpush3.bf16.msra.mxu0 %v1921_v21 }
 0x206   :  { %1306 = vmatprep.subr.bf16.mxu0 %v1927_v22 }
 0x207   :  { %1568 = vmatpush3.bf16.msra.mxu1 %v1861_v6 }
 0x208   :  { %1569 = vmatprep.subr.bf16.mxu1 %v1779_v0 }
 0x209   :  { %1307 = vmatpush3.bf16.msra.mxu0 %v1939_v25 }
 0x20a   :  { %1308 = vmatprep.subr.bf16.mxu0 %v1945_v27 }
 0x20b   :  { %1570 = vmatpush3.bf16.msra.mxu1 %v1877_v13 }
 0x20c   :  { %1571 = vmatprep.subr.bf16.mxu1 %v1779_v0 }
 0x20d   :  { %1309 = vmatpush3.bf16.msra.mxu0 %v1956_v29 }
 0x20e   :  { %1310 = vmatprep.subr.bf16.mxu0 %v1962_v30 }
 0x20f   :  { %1572 = vmatpush3.bf16.msra.mxu1 %v1912_v19 }
 0x210   :  { %1573 = vmatprep.subr.bf16.mxu1 %v1779_v0 }
 0x211   :  { %1311 = vmatpush3.bf16.msra.mxu0 %v1997_v34 }
 0x212   :  { %1312 = vmatprep.subr.bf16.mxu0 %v2004_v36 }
 0x213   :  { %1574 = vmatpush3.bf16.msra.mxu1 %v1915_v20 }
 0x214   :  { %1575 = vmatprep.subr.bf16.mxu1 %v1779_v0 }
 0x215   :  { %1313 = vmatpush3.bf16.msra.mxu0 %v2010_v37 }
 0x216   :  { %1314 = vmatprep.subr.bf16.mxu0 %v2016_v38 }
 0x217   :  { %1576 = vmatpush3.bf16.msra.mxu1 %v1947_v28 }
 0x218   :  { %1581 = vmatprep.subr.bf16.mxu1 %v1779_v0 }
 0x219   :  { %1315 = vmatpush3.bf16.msra.mxu0 %v2021_v39 }
 0x21a   :  { %1331 = vmatprep.subr.bf16.mxu0 %v1883_v14 }
 0x2cd   :  { %v554_v11 = vpop.f32.mrb[8].mxu1 }
 0x2ce   :  { %v560_v12 = vadd.f32 %v2026_v41, %v554_v11  ;;  %v1559_v23 = vpop.f32.mrb[9].mxu1 }
 0x2cf   :  { %v1285_v24 = vpop.f32.mrb[12].mxu0  ;;  %v557_v26 = vpop.f32.mrb[10].mxu1 }
 0x2d0   :  { %v561_v31 = vmax.f32 %v560_v12, 0.0  ;;  %v1286_v32 = vpop.f32.mrb[13].mxu0  ;;  %v1560_v33 = vpop.f32.mrb[11].mxu1 }
 0x2d1   :  { %v1287_v35 = vadd.f32 %v1286_v32, %v1285_v24  ;;  %v1288_v40 = vpop.f32.mrb[14].mxu0 }
 0x2d2   :  { %v562_v42 = vpack.c.bf16 %v561_v31, %v561_v31  ;;  %v1289_v44 = vpop.f32.mrb[15].mxu0 }
 0x2d3   :  { %v2111_v45 = vmax.f32 %v1287_v35, 0.0 }
 0x2d4   :  { %1578 = vmatmul.mubr.bf16.vlgmr.msra.gmra.mrb[12].mxu1 %v562_v42 }
 0x2d5   :  { %v563_v46 = vpack.c.bf16 %v2111_v45, %v2111_v45  ;;  %1582 = vmatpush3.bf16.msra.mxu1 %v1845_v1  ;;  %1597 = vmatprep.mubr.msk.bf16.mxu1 %vm1780_vm0, %v1779_v0 }
 0x2d6   :  { %1583 = vmatprep.subr.bf16.mxu1 %v1779_v0 }
 0x2d7   :  { %596 = vmatprep.mubr.bf16.mxu0 %v563_v46 }
 0x2d8   :  { %597 = vmatmul.mubr.bf16.vlgmr.msra.gmra.mrb[16].mxu0 %v562_v42 }
 0x2d9   :  { %1584 = vmatpush3.bf16.msra.mxu1 %v1848_v2  ;;  %1332 = vmatpush3.bf16.msra.mxu0 %v1888_v15 }
 0x2da   :  { %1585 = vmatprep.subr.bf16.mxu1 %v1779_v0  ;;  %1333 = vmatprep.subr.bf16.mxu0 %v1895_v16 }
 0x2dd   :  { %1586 = vmatpush3.bf16.msra.mxu1 %v1855_v4  ;;  %1334 = vmatpush3.bf16.msra.mxu0 %v1903_v17 }
 0x2de   :  { %1587 = vmatprep.subr.bf16.mxu1 %v1779_v0  ;;  %1335 = vmatprep.subr.bf16.mxu0 %v1909_v18 }
 0x2e1   :  { %1588 = vmatpush3.bf16.msra.mxu1 %v1861_v6  ;;  %1336 = vmatpush3.bf16.msra.mxu0 %v1921_v21 }
 0x2e2   :  { %1589 = vmatprep.subr.bf16.mxu1 %v1779_v0  ;;  %1337 = vmatprep.subr.bf16.mxu0 %v1927_v22 }
 0x2e5   :  { %1590 = vmatpush3.bf16.msra.mxu1 %v1877_v13  ;;  %1338 = vmatpush3.bf16.msra.mxu0 %v1939_v25 }
 0x2e6   :  { %1591 = vmatprep.subr.bf16.mxu1 %v1779_v0  ;;  %1339 = vmatprep.subr.bf16.mxu0 %v1945_v27 }
 0x2e9   :  { %1592 = vmatpush3.bf16.msra.mxu1 %v1912_v19  ;;  %1340 = vmatpush3.bf16.msra.mxu0 %v1956_v29 }
 0x2ea   :  { %1593 = vmatprep.subr.bf16.mxu1 %v1779_v0  ;;  %1341 = vmatprep.subr.bf16.mxu0 %v1962_v30 }
 0x2ed   :  { %1594 = vmatpush3.bf16.msra.mxu1 %v1915_v20  ;;  %1342 = vmatpush3.bf16.msra.mxu0 %v1997_v34 }
 0x2ee   :  { %1595 = vmatprep.subr.bf16.mxu1 %v1779_v0  ;;  %1343 = vmatprep.subr.bf16.mxu0 %v2004_v36 }
 0x2f1   :  { %1596 = vmatpush3.bf16.msra.mxu1 %v1947_v28  ;;  %1344 = vmatpush3.bf16.msra.mxu0 %v2010_v37 }
 0x2f2   :  { %1345 = vmatprep.subr.bf16.mxu0 %v2016_v38  ;;  %1601 = vmatprep.subr.bf16.mxu1 %v1779_v0 }
 0x2f5   :  { %1346 = vmatpush3.bf16.msra.mxu0 %v2021_v39 }
 0x2f6   :  { %1362 = vmatprep.subr.bf16.mxu0 %v1883_v14 }
 0x3a7   :  { %v639_v41 = vpop.f32.mrb[12].mxu1 }
 0x3a8   :  { %v645_v47 = vadd.f32 %v2028_v43, %v639_v41  ;;  %v1579_v48 = vpop.f32.mrb[13].mxu1 }
 0x3a9   :  { %v642_v49 = vpop.f32.mrb[14].mxu1 }
 0x3aa   :  { %v646_v50 = vmax.f32 %v645_v47, 0.0  ;;  %v1580_v51 = vpop.f32.mrb[15].mxu1 }
 0x3ab   :  { %v1316_v56 = vpop.f32.mrb[16].mxu0 }
 0x3ac   :  { %v647_v57 = vpack.c.bf16 %v646_v50, %v646_v50  ;;  %v1317_v58 = vpop.f32.mrb[17].mxu0 }
 0x3ad   :  { %v1318_v59 = vadd.f32 %v1317_v58, %v1316_v56  ;;  %v1319_v60 = vpop.f32.mrb[18].mxu0  ;;  %v1721_v58 = vld [vmem:[#allocation4 + $0x10] sm:$0xff]  }
 0x3ae   :  { %v1320_v61 = vpop.f32.mrb[19].mxu0  ;;  %1598 = vmatmul.mubr.bf16.vlgmr.msra.gmra.mrb[16].mxu1 %v647_v57 }
 0x3af   :  { %v2150_v62 = vmax.f32 %v1318_v59, 0.0  ;;  %1602 = vmatpush3.bf16.msra.mxu1 %v1845_v1  ;;  %1617 = vmatprep.mubr.msk.bf16.mxu1 %vm1780_vm0, %v1779_v0 }
 0x3b0   :  { %1603 = vmatprep.subr.bf16.mxu1 %v1779_v0 }
 0x3b1   :  { %v648_v43 = vpack.c.bf16 %v2150_v62, %v2150_v62 }
 0x3b3   :  { %681 = vmatprep.mubr.bf16.mxu0 %v648_v43  ;;  %1604 = vmatpush3.bf16.msra.mxu1 %v1848_v2  ;;  %v1722_v43 = vld [vmem:[#allocation4 + $0x18] sm:$0xff]  }
 0x3b4   :  { %682 = vmatmul.mubr.bf16.vlgmr.msra.gmra.mrb[20].mxu0 %v647_v57  ;;  %1605 = vmatprep.subr.bf16.mxu1 %v1779_v0  ;;  %v1030_v57 = vpack.c.bf16 %v2111_v45, %v2072_v8  ;;  %v1724_v8 = vld [vmem:[#allocation4 + $0x28] sm:$0xff]   ;;  %v1725_v45 = vld [vmem:[#allocation4 + $0x30] sm:$0xff]  }
 0x3b5   :  { %1363 = vmatpush3.bf16.msra.mxu0 %v1888_v15 }
 0x3b6   :  { %1364 = vmatprep.subr.bf16.mxu0 %v1895_v16 }
 0x3b7   :  { %1606 = vmatpush3.bf16.msra.mxu1 %v1855_v4 }
 0x3b8   :  { %1607 = vmatprep.subr.bf16.mxu1 %v1779_v0 }
 0x3b9   :  { %1365 = vmatpush3.bf16.msra.mxu0 %v1903_v17 }
 0x3ba   :  { %1366 = vmatprep.subr.bf16.mxu0 %v1909_v18 }
 0x3bb   :  { %1608 = vmatpush3.bf16.msra.mxu1 %v1861_v6 }
 0x3bc   :  { %1609 = vmatprep.subr.bf16.mxu1 %v1779_v0 }
 0x3bd   :  { %1367 = vmatpush3.bf16.msra.mxu0 %v1921_v21 }
 0x3be   :  { %1368 = vmatprep.subr.bf16.mxu0 %v1927_v22 }
 0x3bf   :  { %1610 = vmatpush3.bf16.msra.mxu1 %v1877_v13 }
 0x3c0   :  { %1611 = vmatprep.subr.bf16.mxu1 %v1779_v0 }
 0x3c1   :  { %1369 = vmatpush3.bf16.msra.mxu0 %v1939_v25 }
 0x3c2   :  { %1370 = vmatprep.subr.bf16.mxu0 %v1945_v27 }
 0x3c3   :  { %1612 = vmatpush3.bf16.msra.mxu1 %v1912_v19 }
 0x3c4   :  { %1613 = vmatprep.subr.bf16.mxu1 %v1779_v0 }
 0x3c5   :  { %1371 = vmatpush3.bf16.msra.mxu0 %v1956_v29 }
 0x3c6   :  { %1372 = vmatprep.subr.bf16.mxu0 %v1962_v30 }
 0x3c7   :  { %1614 = vmatpush3.bf16.msra.mxu1 %v1915_v20 }
 0x3c8   :  { %1615 = vmatprep.subr.bf16.mxu1 %v1779_v0 }
 0x3c9   :  { %1373 = vmatpush3.bf16.msra.mxu0 %v1997_v34 }
 0x3ca   :  { %1374 = vmatprep.subr.bf16.mxu0 %v2004_v36 }
 0x3cb   :  { %1616 = vmatpush3.bf16.msra.mxu1 %v1947_v28 }
 0x3cc   :  { %1621 = vmatprep.subr.bf16.mxu1 %v1779_v0 }
 0x3cd   :  { %1375 = vmatpush3.bf16.msra.mxu0 %v2010_v37 }
 0x3ce   :  { %1376 = vmatprep.subr.bf16.mxu0 %v2016_v38 }
 0x3d1   :  { %1377 = vmatpush3.bf16.msra.mxu0 %v2021_v39 }
 0x3d2   :  { %1393 = vmatprep.subr.bf16.mxu0 %v1883_v14 }
 0x481   :  { %v724_v63 = vpop.f32.mrb[16].mxu1 }
 0x482   :  { %v730_v3 = vadd.f32 %v724_v63, %v2066_v53  ;;  %v1599_v5 = vpop.f32.mrb[17].mxu1 }
 0x483   :  { %v727_v7 = vpop.f32.mrb[18].mxu1  ;;  %v1723_v5 = vld [vmem:[#allocation4 + $0x20] sm:$0xff]  }
 0x484   :  { %v731_v9 = vmax.f32 %v730_v3, 0.0  ;;  %v1600_v10 = vpop.f32.mrb[19].mxu1  ;;  %v1726_v7 = vld [vmem:[#allocation4 + $0x38] sm:$0xff]  }
 0x486   :  { %v732_v11 = vpack.c.bf16 %v731_v9, %v731_v9 }
 0x487   :  { %v1347_v12 = vpop.f32.mrb[20].mxu0 }
 0x488   :  { %v1348_v23 = vpop.f32.mrb[21].mxu0  ;;  %1618 = vmatmul.mubr.bf16.vlgmr.msra.gmra.mrb[20].mxu1 %v732_v11 }
 0x489   :  { %v1349_v24 = vadd.f32 %v1348_v23, %v1347_v12  ;;  %v1350_v26 = vpop.f32.mrb[22].mxu0  ;;  %1622 = vmatpush3.bf16.msra.mxu1 %v1845_v1  ;;  %1637 = vmatprep.mubr.msk.bf16.mxu1 %vm1780_vm0, %v1779_v0 }
 0x48a   :  { %v1351_v31 = vpop.f32.mrb[23].mxu0  ;;  %1623 = vmatprep.subr.bf16.mxu1 %v1779_v0 }
 0x48b   :  { %v2193_v32 = vmax.f32 %v1349_v24, 0.0 }
 0x48d   :  { %v733_v53 = vpack.c.bf16 %v2193_v32, %v2193_v32  ;;  %1624 = vmatpush3.bf16.msra.mxu1 %v1848_v2 }
 0x48e   :  { %1625 = vmatprep.subr.bf16.mxu1 %v1779_v0 }
 0x48f   :  { %766 = vmatprep.mubr.bf16.mxu0 %v733_v53 }
 0x490   :  { %767 = vmatmul.mubr.bf16.vlgmr.msra.gmra.mrb[24].mxu0 %v732_v11 }
 0x491   :  { %1626 = vmatpush3.bf16.msra.mxu1 %v1855_v4  ;;  %1394 = vmatpush3.bf16.msra.mxu0 %v1888_v15 }
 0x492   :  { %1627 = vmatprep.subr.bf16.mxu1 %v1779_v0  ;;  %1395 = vmatprep.subr.bf16.mxu0 %v1895_v16 }
 0x495   :  { %1628 = vmatpush3.bf16.msra.mxu1 %v1861_v6  ;;  %1396 = vmatpush3.bf16.msra.mxu0 %v1903_v17 }
 0x496   :  { %1629 = vmatprep.subr.bf16.mxu1 %v1779_v0  ;;  %1397 = vmatprep.subr.bf16.mxu0 %v1909_v18 }
 0x499   :  { %1630 = vmatpush3.bf16.msra.mxu1 %v1877_v13  ;;  %1398 = vmatpush3.bf16.msra.mxu0 %v1921_v21 }
 0x49a   :  { %1631 = vmatprep.subr.bf16.mxu1 %v1779_v0  ;;  %1399 = vmatprep.subr.bf16.mxu0 %v1927_v22 }
 0x49d   :  { %1632 = vmatpush3.bf16.msra.mxu1 %v1912_v19  ;;  %1400 = vmatpush3.bf16.msra.mxu0 %v1939_v25 }
 0x49e   :  { %1633 = vmatprep.subr.bf16.mxu1 %v1779_v0  ;;  %1401 = vmatprep.subr.bf16.mxu0 %v1945_v27 }
 0x4a1   :  { %1634 = vmatpush3.bf16.msra.mxu1 %v1915_v20  ;;  %1402 = vmatpush3.bf16.msra.mxu0 %v1956_v29 }
 0x4a2   :  { %1635 = vmatprep.subr.bf16.mxu1 %v1779_v0  ;;  %1403 = vmatprep.subr.bf16.mxu0 %v1962_v30 }
 0x4a5   :  { %1636 = vmatpush3.bf16.msra.mxu1 %v1947_v28  ;;  %1404 = vmatpush3.bf16.msra.mxu0 %v1997_v34 }
 0x4a6   :  { %1405 = vmatprep.subr.bf16.mxu0 %v2004_v36  ;;  %1641 = vmatprep.subr.bf16.mxu1 %v1779_v0 }
 0x4a9   :  { %1406 = vmatpush3.bf16.msra.mxu0 %v2010_v37 }
 0x4aa   :  { %1407 = vmatprep.subr.bf16.mxu0 %v2016_v38 }
 0x4ad   :  { %1408 = vmatpush3.bf16.msra.mxu0 %v2021_v39 }
 0x4ae   :  { %1424 = vmatprep.subr.bf16.mxu0 %v1883_v14 }
 0x55b   :  { %v809_v33 = vpop.f32.mrb[20].mxu1 }
 0x55c   :  { %v815_v35 = vadd.f32 %v809_v33, %v2070_v55  ;;  %v1619_v40 = vpop.f32.mrb[21].mxu1 }
 0x55d   :  { %v812_v42 = vpop.f32.mrb[22].mxu1 }
 0x55e   :  { %v816_v44 = vmax.f32 %v815_v35, 0.0  ;;  %v1620_v46 = vpop.f32.mrb[23].mxu1 }
 0x560   :  { %v817_v41 = vpack.c.bf16 %v816_v44, %v816_v44 }
 0x562   :  { %1638 = vmatmul.mubr.bf16.vlgmr.msra.gmra.mrb[24].mxu1 %v817_v41 }
 0x563   :  { %v1378_v47 = vpop.f32.mrb[24].mxu0  ;;  %1642 = vmatpush3.bf16.msra.mxu1 %v1845_v1  ;;  %1657 = vmatprep.mubr.msk.bf16.mxu1 %vm1780_vm0, %v1779_v0  ;;  %v1719_v1 = vld [vmem:[#allocation4] sm:$0xff]  }
 0x564   :  { %v1379_v48 = vpop.f32.mrb[25].mxu0  ;;  %1643 = vmatprep.subr.bf16.mxu1 %v1779_v0 }
 0x565   :  { %v1380_v49 = vadd.f32 %v1379_v48, %v1378_v47  ;;  %v1381_v50 = vpop.f32.mrb[26].mxu0 }
 0x566   :  { %v1382_v51 = vpop.f32.mrb[27].mxu0 }
 0x567   :  { %v2232_v56 = vmax.f32 %v1380_v49, 0.0  ;;  %1644 = vmatpush3.bf16.msra.mxu1 %v1848_v2 }
 0x568   :  { %1645 = vmatprep.subr.bf16.mxu1 %v1779_v0 }
 0x569   :  { %v818_v55 = vpack.c.bf16 %v2232_v56, %v2232_v56 }
 0x56b   :  { %851 = vmatprep.mubr.bf16.mxu0 %v818_v55  ;;  %1646 = vmatpush3.bf16.msra.mxu1 %v1855_v4 }
 0x56c   :  { %852 = vmatmul.mubr.bf16.vlgmr.msra.gmra.mrb[28].mxu0 %v817_v41  ;;  %1647 = vmatprep.subr.bf16.mxu1 %v1779_v0 }
 0x56d   :  { %1425 = vmatpush3.bf16.msra.mxu0 %v1888_v15 }
 0x56e   :  { %1426 = vmatprep.subr.bf16.mxu0 %v1895_v16 }
 0x56f   :  { %1648 = vmatpush3.bf16.msra.mxu1 %v1861_v6 }
 0x570   :  { %1649 = vmatprep.subr.bf16.mxu1 %v1779_v0 }
 0x571   :  { %1427 = vmatpush3.bf16.msra.mxu0 %v1903_v17 }
 0x572   :  { %1428 = vmatprep.subr.bf16.mxu0 %v1909_v18 }
 0x573   :  { %1650 = vmatpush3.bf16.msra.mxu1 %v1877_v13 }
 0x574   :  { %1651 = vmatprep.subr.bf16.mxu1 %v1779_v0 }
 0x575   :  { %1429 = vmatpush3.bf16.msra.mxu0 %v1921_v21 }
 0x576   :  { %1430 = vmatprep.subr.bf16.mxu0 %v1927_v22 }
 0x577   :  { %1652 = vmatpush3.bf16.msra.mxu1 %v1912_v19 }
 0x578   :  { %1653 = vmatprep.subr.bf16.mxu1 %v1779_v0 }
 0x579   :  { %1431 = vmatpush3.bf16.msra.mxu0 %v1939_v25 }
 0x57a   :  { %1432 = vmatprep.subr.bf16.mxu0 %v1945_v27 }
 0x57b   :  { %1654 = vmatpush3.bf16.msra.mxu1 %v1915_v20 }
 0x57c   :  { %1655 = vmatprep.subr.bf16.mxu1 %v1779_v0 }
 0x57d   :  { %1433 = vmatpush3.bf16.msra.mxu0 %v1956_v29 }
 0x57e   :  { %1434 = vmatprep.subr.bf16.mxu0 %v1962_v30 }
 0x57f   :  { %1656 = vmatpush3.bf16.msra.mxu1 %v1947_v28  ;;  %v1720_v28 = vld [vmem:[#allocation4 + $0x8] sm:$0xff]  }
 0x580   :  { %1661 = vmatprep.subr.bf16.mxu1 %v1719_v1 }
 0x581   :  { %1435 = vmatpush3.bf16.msra.mxu0 %v1997_v34 }
 0x582   :  { %1436 = vmatprep.subr.bf16.mxu0 %v2004_v36 }
 0x585   :  { %1437 = vmatpush3.bf16.msra.mxu0 %v2010_v37 }
 0x586   :  { %1438 = vmatprep.subr.bf16.mxu0 %v2016_v38 }
 0x589   :  { %1439 = vmatpush3.bf16.msra.mxu0 %v2021_v39 }
 0x58a   :  { %1455 = vmatprep.subr.bf16.mxu0 %v1883_v14 }
 0x635   :  { %v894_v0 = vpop.f32.mrb[24].mxu1 }
 0x636   :  { %v900_v2 = vadd.f32 %v2064_v52, %v894_v0  ;;  %v1639_v4 = vpop.f32.mrb[25].mxu1 }
 0x637   :  { %v897_v6 = vpop.f32.mrb[26].mxu1 }
 0x638   :  { %v901_v13 = vmax.f32 %v900_v2, 0.0  ;;  %v1640_v19 = vpop.f32.mrb[27].mxu1 }
 0x63a   :  { %v902_v20 = vpack.c.bf16 %v901_v13, %v901_v13 }
 0x63c   :  { %1658 = vmatmul.mubr.bf16.vlgmr.msra.gmra.mrb[28].mxu1 %v902_v20 }
 0x63d   :  { %1662 = vmatpush3.bf16.msra.mxu1 %v1719_v1  ;;  %1677 = vmatprep.mubr.bf16.mxu1 %v1030_v57 }
 0x63e   :  { %1663 = vmatprep.subr.bf16.mxu1 %v1720_v28 }
 0x63f   :  { %v1409_v14 = vpop.f32.mrb[28].mxu0 }
 0x640   :  { %v1410_v59 = vpop.f32.mrb[29].mxu0 }
 0x641   :  { %v1411_v60 = vadd.f32 %v1410_v59, %v1409_v14  ;;  %1664 = vmatpush3.bf16.msra.mxu1 %v1720_v28  ;;  %v1412_v61 = vpop.f32.mrb[30].mxu0 }
 0x642   :  { %v1413_v52 = vpop.f32.mrb[31].mxu0  ;;  %1665 = vmatprep.subr.bf16.mxu1 %v1721_v58 }
 0x643   :  { %v859_v63 = vmax.f32 %v1411_v60, 0.0 }
 0x645   :  { %v903_v3 = vpack.c.bf16 %v859_v63, %v859_v63  ;;  %1666 = vmatpush3.bf16.msra.mxu1 %v1721_v58 }
 0x646   :  { %1667 = vmatprep.subr.bf16.mxu1 %v1722_v43 }
 0x647   :  { %936 = vmatprep.mubr.bf16.mxu0 %v903_v3 }
 0x648   :  { %937 = vmatmul.mubr.bf16.vlgmr.msra.gmra.mrb[32].mxu0 %v902_v20 }
 0x649   :  { %1668 = vmatpush3.bf16.msra.mxu1 %v1722_v43  ;;  %1456 = vmatpush3.bf16.msra.mxu0 %v1888_v15  ;;  %v1031_v15 = vpack.c.bf16 %v2193_v32, %v2150_v62 }
 0x64a   :  { %1669 = vmatprep.subr.bf16.mxu1 %v1723_v5  ;;  %1457 = vmatprep.subr.bf16.mxu0 %v1895_v16  ;;  %v1032_v16 = vpack.c.bf16 %v859_v63, %v2232_v56 }
 0x64d   :  { %1670 = vmatpush3.bf16.msra.mxu1 %v1723_v5  ;;  %1458 = vmatpush3.bf16.msra.mxu0 %v1903_v17 }
 0x64e   :  { %1671 = vmatprep.subr.bf16.mxu1 %v1724_v8  ;;  %1459 = vmatprep.subr.bf16.mxu0 %v1909_v18 }
 0x651   :  { %1672 = vmatpush3.bf16.msra.mxu1 %v1724_v8  ;;  %1460 = vmatpush3.bf16.msra.mxu0 %v1921_v21 }
 0x652   :  { %1673 = vmatprep.subr.bf16.mxu1 %v1725_v45  ;;  %1461 = vmatprep.subr.bf16.mxu0 %v1927_v22 }
 0x655   :  { %1674 = vmatpush3.bf16.msra.mxu1 %v1725_v45  ;;  %1462 = vmatpush3.bf16.msra.mxu0 %v1939_v25 }
 0x656   :  { %1675 = vmatprep.subr.bf16.mxu1 %v1726_v7  ;;  %1463 = vmatprep.subr.bf16.mxu0 %v1945_v27 }
 0x659   :  { %1676 = vmatpush3.bf16.msra.mxu1 %v1726_v7  ;;  %1464 = vmatpush3.bf16.msra.mxu0 %v1956_v29 }
 0x65a   :  { %1465 = vmatprep.subr.bf16.mxu0 %v1962_v30 }
 0x65c   :  { %1678 = vmatmul.mubr.bf16.vlgmr.msra.gmra.mrb[32].mxu1 %v1031_v15 }
 0x65d   :  { %1681 = vmatprep.mubr.bf16.mxu1 %v1032_v16  ;;  %1466 = vmatpush3.bf16.msra.mxu0 %v1997_v34 }
 0x65e   :  { %1467 = vmatprep.subr.bf16.mxu0 %v2004_v36 }
 0x661   :  { %1468 = vmatpush3.bf16.msra.mxu0 %v2010_v37  ;;  %v1214_v37 = vld [vmem:[%s2319_s5] ss:$0 sm:$0xff] }
 0x662   :  { %1469 = vmatprep.subr.bf16.mxu0 %v2016_v38 }
 0x665   :  { %1470 = vmatpush3.bf16.msra.mxu0 %v2021_v39 }
 0x70f   :  { %v979_v17 = vpop.f32.mrb[28].mxu1 }
 0x710   :  { %v985_v18 = vadd.f32 %v2068_v54, %v979_v17  ;;  %v1659_v21 = vpop.f32.mrb[29].mxu1 }
 0x711   :  { %v982_v22 = vpop.f32.mrb[30].mxu1 }
 0x712   :  { %v1660_v25 = vpop.f32.mrb[31].mxu1  ;;  %v986_v9 = vmax.f32 %v985_v18, 0.0 }
 0x714   :  { %v987_v11 = vpack.c.bf16 %v986_v9, %v986_v9 }
 0x71b   :  { %v1440_v27 = vpop.f32.mrb[32].mxu0 }
 0x71c   :  { %v1441_v29 = vpop.f32.mrb[33].mxu0 }
 0x71d   :  { %v1442_v30 = vadd.f32 %v1441_v29, %v1440_v27  ;;  %v1443_v62 = vpop.f32.mrb[34].mxu0 }
 0x71e   :  { %v1444_v34 = vpop.f32.mrb[35].mxu0 }
 0x71f   :  { %v944_v10 = vmax.f32 %v1442_v30, 0.0 }
 0x721   :  { %v988_v36 = vpack.c.bf16 %v944_v10, %v944_v10 }
 0x723   :  { %1021 = vmatprep.mubr.bf16.mxu0 %v988_v36 }
 0x724   :  { %1022 = vmatmul.mubr.bf16.vlgmr.msra.gmra.mrb[36].mxu0 %v987_v11 }
 0x72f   :  { %v1679_v38 = vpop.f32.mrb[32].mxu1 }
 0x730   :  { %v1148_v39 = vadd.f32 %v1679_v38, %v1214_v37  ;;  %v1139_v54 = vpop.f32.mrb[33].mxu1 }
 0x731   :  { %v1140_v12 = vadd.f32 %v1214_v37, %v1139_v54  ;;  %v1680_v23 = vpop.f32.mrb[34].mxu1 }
 0x732   :  { %1172 = vst [vmem:[%s2320_s6 + $0x10] sm:$0xff] %v1148_v39  ;;  %v1151_v24 = vadd.f32 %v1680_v23, %v1214_v37  ;;  %v1142_v26 = vpop.f32.mrb[35].mxu1 }
 0x733   :  { %1170 = vst [vmem:[%s2320_s6] sm:$0xff] %v1140_v12  ;;  %v1143_v31 = vadd.f32 %v1214_v37, %v1142_v26 }
 0x734   :  { %1173 = vst [vmem:[%s2320_s6 + $0x18] sm:$0xff] %v1151_v24 }
 0x735   :  { %1171 = vst [vmem:[%s2320_s6 + $0x8] sm:$0xff] %v1143_v31 }
 0x7f7   :  { %v1471_v32 = vpop.f32.mrb[36].mxu0 }
 0x7f8   :  { %v1472_v53 = vpop.f32.mrb[37].mxu0 }
 0x7f9   :  { %v1473_v33 = vadd.f32 %v1472_v53, %v1471_v32  ;;  %v1474_v35 = vpop.f32.mrb[38].mxu0 }
 0x7fa   :  { %v1475_v40 = vpop.f32.mrb[39].mxu0 }
 0x7fb   :  { %v1029_v42 = vmax.f32 %v1473_v33, 0.0 }
 0x7fd   :  { %v1033_v44 = vpack.c.bf16 %v1029_v42, %v944_v10 }
 0x7ff   :  { %1682 = vmatmul.mubr.bf16.gmra.mrb[36].mxu1 %v1033_v44 }
 0x8d2   :  { %v1683_v46 = vpop.f32.mrb[36].mxu1 }
 0x8d3   :  { %v1164_v41 = vadd.f32 %v1683_v46, %v1214_v37  ;;  %v1155_v47 = vpop.f32.mrb[37].mxu1 }
 0x8d4   :  { %v1156_v48 = vadd.f32 %v1214_v37, %v1155_v47  ;;  %v1684_v49 = vpop.f32.mrb[38].mxu1 }
 0x8d5   :  { %1176 = vst [vmem:[%s2320_s6 + $0x30] sm:$0xff] %v1164_v41  ;;  %v1167_v50 = vadd.f32 %v1684_v49, %v1214_v37  ;;  %v1158_v51 = vpop.f32.mrb[39].mxu1 }
 0x8d6   :  { %1174 = vst [vmem:[%s2320_s6 + $0x20] sm:$0xff] %v1156_v48  ;;  %v1159_v56 = vadd.f32 %v1214_v37, %v1158_v51 }
 0x8d7   :  { %1177 = vst [vmem:[%s2320_s6 + $0x38] sm:$0xff] %v1167_v50 }
 0x8d8   :  { %1175 = vst [vmem:[%s2320_s6 + $0x28] sm:$0xff] %v1159_v56 }
 0x8d9   :  { %1182 = vsyncpa [#allocation3], 1 }
 0x8da   :  { %1183 = vsyncpa [#allocation5], 1 }

</bundles_post_ra>
